<compile_context>
chip_gen: v7x
topology: tpu7x:2x2x1
jax: 0.10.0
libtpu: 0.0.40
codegen_flags: <defaults>
</compile_context>

<pallas_src>
import functools

import jax
import jax.numpy as jnp
from jax.experimental import pallas as pl
from jax.experimental.pallas import tpu as pltpu


# ---------------------------------------------------------------------------
# Pallas kernel: one grid step processes `Bb` batch elements (default: all).
# ---------------------------------------------------------------------------
def _mha_kernel(q_ref, k_ref, v_ref, mask_ref,
                wq_ref, wk_ref, wv_ref, wo_ref,
                out_ref, *, num_heads):
    Bb, Sq, E = q_ref.shape
    Sk = k_ref.shape[1]
    hd = E // num_heads
    inv_scale = 1.0 / (float(hd) ** 0.5)   # replaces the "/ scale" of the module

    f32, bf16 = jnp.float32, jnp.bfloat16

    # Fold batch into rows so each projection is a single dense (B*S, E) matmul.
    xq = q_ref[...].reshape(Bb * Sq, E).astype(bf16)
    xk = k_ref[...].reshape(Bb * Sk, E).astype(bf16)
    xv = v_ref[...].reshape(Bb * Sk, E).astype(bf16)
    keep = mask_ref[...] != 0               # (Bb, Sq, Sk) bool, True = keep

    out_acc = jnp.zeros((Bb * Sq, E), dtype=f32)

    # Static unroll over heads (num_heads is a small compile-time constant).
    # Weights are already head-major, so there are no lane-misaligned activation
    # slices and no head concat anywhere in the kernel.
    for h in range(num_heads):
        wq_h = wq_ref[h]                    # (E, hd)  bf16
        wk_h = wk_ref[h]                    # (E, hd)  bf16
        wv_h = wv_ref[h]                    # (E, hd)  bf16
        wo_h = wo_ref[h]                    # (hd, E)  bf16

        qh = jnp.dot(xq, wq_h, preferred_element_type=f32) * inv_scale
        kh = jnp.dot(xk, wk_h, preferred_element_type=f32)
        vh = jnp.dot(xv, wv_h, preferred_element_type=f32)

        qh = qh.reshape(Bb, Sq, hd).astype(bf16)
        kh = kh.reshape(Bb, Sk, hd).astype(bf16)
        vh = vh.reshape(Bb, Sk, hd).astype(bf16)

        # Scores for all batch elements at once (single-leading-batch einsum).
        s = jnp.einsum('bqd,bkd->bqk', qh, kh, preferred_element_type=f32)
        # Finite sentinel instead of -inf: fully-masked rows stay NaN-free.
        s = jnp.where(keep, s, -1e30)

        # Softmax in f32; the reciprocal runs on the EUP slot (approx=True).
        m = jnp.max(s, axis=-1, keepdims=True)
        e = jnp.exp(s - m)
        denom = jnp.sum(e, axis=-1, keepdims=True)
        p = (e * pl.reciprocal(denom, approx=True)).astype(bf16)

        ctx = jnp.einsum('bqk,bkd->bqd', p, vh, preferred_element_type=f32)
        ctx = ctx.reshape(Bb * Sq, hd).astype(bf16)

        # Output projection accumulated per head into a lane-dense f32 slab:
        #   out = concat_h(ctx_h) @ Wo  ==  sum_h ctx_h @ Wo[h*hd:(h+1)*hd, :]
        out_acc = out_acc + jnp.dot(ctx, wo_h, preferred_element_type=f32)

    out_ref[...] = out_acc.reshape(Bb, Sq, E).astype(out_ref.dtype)


# ---------------------------------------------------------------------------
# wrapper
# ---------------------------------------------------------------------------
def multi_head_attention(q, k, v, mask, wq, wk, wv, wo, num_heads, *,
                         batch_blocks=1):
    """Pallas equivalent of MultiHeadAttentionLayer.forward(Q, K, V, mask).

    Weights are given as (in_features, out_features) so y = x @ W
    (== x @ W.T with PyTorch's (out, in) layout).  `mask` is boolean-like,
    True/1 = keep (PyTorch does masked_fill(~mask, -inf)).

    batch_blocks=1 -> one fat grid step (best on single-TC v5e/v6e chips).
    batch_blocks=2 -> two 'parallel' grid steps for v7x megacore sharding.
    """
    B, Sq, E = q.shape
    Sk = k.shape[1]
    assert E % num_heads == 0
    hd = E // num_heads
    assert B % batch_blocks == 0
    Bb = B // batch_blocks

    if mask is None:
        # TODO(synk): a None / all-ones mask could skip masking inside the kernel.
        mask = jnp.ones((B, Sq, Sk), dtype=jnp.bool_)

    # Head-major, bf16 weight layouts -- computed once outside the kernel
    # (zero in-kernel relayout cost, half the HBM->VMEM weight traffic).
    wq_h = jnp.transpose(wq.reshape(E, num_heads, hd), (1, 0, 2)).astype(jnp.bfloat16)
    wk_h = jnp.transpose(wk.reshape(E, num_heads, hd), (1, 0, 2)).astype(jnp.bfloat16)
    wv_h = jnp.transpose(wv.reshape(E, num_heads, hd), (1, 0, 2)).astype(jnp.bfloat16)
    wo_h = wo.reshape(num_heads, hd, E).astype(jnp.bfloat16)

    mask_i = mask.astype(jnp.int32)   # compact, robust VMEM layout (not f32)

    kernel = functools.partial(_mha_kernel, num_heads=num_heads)
    return pl.pallas_call(
        kernel,
        out_shape=jax.ShapeDtypeStruct((B, Sq, E), q.dtype),
        grid=(batch_blocks,),
        in_specs=[
            pl.BlockSpec((Bb, Sq, E), lambda i: (i, 0, 0)),          # Q
            pl.BlockSpec((Bb, Sk, E), lambda i: (i, 0, 0)),          # K
            pl.BlockSpec((Bb, Sk, E), lambda i: (i, 0, 0)),          # V
            pl.BlockSpec((Bb, Sq, Sk), lambda i: (i, 0, 0)),         # mask
            pl.BlockSpec((num_heads, E, hd), lambda i: (0, 0, 0)),   # Wq (head-major)
            pl.BlockSpec((num_heads, E, hd), lambda i: (0, 0, 0)),   # Wk
            pl.BlockSpec((num_heads, E, hd), lambda i: (0, 0, 0)),   # Wv
            pl.BlockSpec((num_heads, hd, E), lambda i: (0, 0, 0)),   # Wo (head-major rows)
        ],
        out_specs=pl.BlockSpec((Bb, Sq, E), lambda i: (i, 0, 0)),
        compiler_params=pltpu.CompilerParams(
            dimension_semantics=("parallel",),
            vmem_limit_bytes=32 * 1024 * 1024,
        ),
    )(q, k, v, mask_i, wq_h, wk_h, wv_h, wo_h)


# ---------------------------------------------------------------------------
# main
# ---------------------------------------------------------------------------
if __name__ == "__main__":
    B, S, E, H = 2, 8, 32, 4    # batch, seq, embedding_dim, num_heads

    key = jax.random.PRNGKey(0)
    kq, kk, kv, k1, k2, k3, k4 = jax.random.split(key, 7)

    Q = jax.random.normal(kq, (B, S, E), dtype=jnp.float32)
    K = jax.random.normal(kk, (B, S, E), dtype=jnp.float32)
    V = jax.random.normal(kv, (B, S, E), dtype=jnp.float32)

    causal = jnp.tril(jnp.ones((S, S), dtype=jnp.bool_))
    mask = jnp.broadcast_to(causal, (B, S, S))

    def w(k, shape):
        return 0.1 * jax.random.normal(k, shape, dtype=jnp.float32)

    wq = w(k1, (E, E))
    wk = w(k2, (E, E))
    wv = w(k3, (E, E))
    wo = w(k4, (E, E))

    out = multi_head_attention(Q, K, V, mask, wq, wk, wv, wo, num_heads=H)
    out = jax.block_until_ready(out)

    # pure-JAX f32 reference (mirrors the PyTorch forward) for a sanity check
    def ref(Q, K, V, mask):
        hd = E // H

        def split(x):
            return x.reshape(B, S, H, hd).transpose(0, 2, 1, 3)

        q = split(Q @ wq)
        k = split(K @ wk)
        v = split(V @ wv)
        s = jnp.einsum('bhqd,bhkd->bhqk', q, k) / jnp.sqrt(jnp.float32(hd))
        s = jnp.where(mask[:, None, :, :], s, -jnp.inf)
        p = jax.nn.softmax(s, axis=-1)
        ctx = jnp.einsum('bhqk,bhkd->bhqd', p, v)
        ctx = ctx.transpose(0, 2, 1, 3).reshape(B, S, E)
        return ctx @ wo

    expected = ref(Q, K, V, mask)
    assert out.shape == (B, S, E)
    assert bool(jnp.all(jnp.isfinite(out)))
    assert bool(jnp.allclose(out, expected, rtol=3e-2, atol=3e-2)), (
        "max abs err = %f" % float(jnp.max(jnp.abs(out - expected))))
    print("KERNEL_OK")
</pallas_src>

<mosaic_0001>
module attributes {stable_mosaic.version = 11 : i64} {
  func.func @_mha_kernel(%arg0: i32, %arg1: memref<2x8x32xf32, #tpu.memory_space<vmem>>, %arg2: memref<2x8x32xf32, #tpu.memory_space<vmem>>, %arg3: memref<2x8x32xf32, #tpu.memory_space<vmem>>, %arg4: memref<2x8x8xi32, #tpu.memory_space<vmem>>, %arg5: memref<4x32x8xbf16, #tpu.memory_space<vmem>>, %arg6: memref<4x32x8xbf16, #tpu.memory_space<vmem>>, %arg7: memref<4x32x8xbf16, #tpu.memory_space<vmem>>, %arg8: memref<4x8x32xbf16, #tpu.memory_space<vmem>>, %arg9: memref<2x8x32xf32, #tpu.memory_space<vmem>>) attributes {dimension_semantics = [#tpu.dimension_semantics<parallel>], iteration_bounds = array<i64: 1>, scalar_prefetch = 0 : i64, scratch_operands = 0 : i64, tpu.core_type = #tpu.core_type<tc>, window_params = [{transform_indices = @transform_0, window_bounds = array<i64: 2, 8, 32>}, {transform_indices = @transform_1, window_bounds = array<i64: 2, 8, 32>}, {transform_indices = @transform_2, window_bounds = array<i64: 2, 8, 32>}, {transform_indices = @transform_3, window_bounds = array<i64: 2, 8, 8>}, {pipeline_mode = #tpu.pipeline_mode<synchronous>, transform_indices = @transform_4, window_bounds = array<i64: 4, 32, 8>}, {pipeline_mode = #tpu.pipeline_mode<synchronous>, transform_indices = @transform_5, window_bounds = array<i64: 4, 32, 8>}, {pipeline_mode = #tpu.pipeline_mode<synchronous>, transform_indices = @transform_6, window_bounds = array<i64: 4, 32, 8>}, {pipeline_mode = #tpu.pipeline_mode<synchronous>, transform_indices = @transform_7, window_bounds = array<i64: 4, 8, 32>}, {transform_indices = @transform_8, window_bounds = array<i64: 2, 8, 32>}]} {
    %c0 = arith.constant 0 : index
    %c0_0 = arith.constant 0 : index
    %c0_1 = arith.constant 0 : index
    %0 = vector.load %arg1[%c0, %c0_0, %c0_1] : memref<2x8x32xf32, #tpu.memory_space<vmem>>, vector<2x8x32xf32>
    %1 = vector.shape_cast %0 : vector<2x8x32xf32> to vector<16x32xf32>
    %2 = arith.truncf %1 : vector<16x32xf32> to vector<16x32xbf16>
    %c0_2 = arith.constant 0 : index
    %c0_3 = arith.constant 0 : index
    %c0_4 = arith.constant 0 : index
    %3 = vector.load %arg2[%c0_2, %c0_3, %c0_4] : memref<2x8x32xf32, #tpu.memory_space<vmem>>, vector<2x8x32xf32>
    %4 = vector.shape_cast %3 : vector<2x8x32xf32> to vector<16x32xf32>
    %5 = arith.truncf %4 : vector<16x32xf32> to vector<16x32xbf16>
    %c0_5 = arith.constant 0 : index
    %c0_6 = arith.constant 0 : index
    %c0_7 = arith.constant 0 : index
    %6 = vector.load %arg3[%c0_5, %c0_6, %c0_7] : memref<2x8x32xf32, #tpu.memory_space<vmem>>, vector<2x8x32xf32>
    %7 = vector.shape_cast %6 : vector<2x8x32xf32> to vector<16x32xf32>
    %8 = arith.truncf %7 : vector<16x32xf32> to vector<16x32xbf16>
    %c0_8 = arith.constant 0 : index
    %c0_9 = arith.constant 0 : index
    %c0_10 = arith.constant 0 : index
    %9 = vector.load %arg4[%c0_8, %c0_9, %c0_10] : memref<2x8x8xi32, #tpu.memory_space<vmem>>, vector<2x8x8xi32>
    %c0_i32 = arith.constant 0 : i32
    %10 = vector.broadcast %c0_i32 : i32 to vector<2x8x8xi32>
    %11 = arith.cmpi ne, %9, %10 : vector<2x8x8xi32>
    %cst = arith.constant 0.000000e+00 : f32
    %12 = vector.broadcast %cst : f32 to vector<16x32xf32>
    %c0_11 = arith.constant 0 : index
    %c0_12 = arith.constant 0 : index
    %c0_13 = arith.constant 0 : index
    %13 = vector.load %arg5[%c0_11, %c0_12, %c0_13] : memref<4x32x8xbf16, #tpu.memory_space<vmem>>, vector<1x32x8xbf16>
    %14 = vector.shape_cast %13 : vector<1x32x8xbf16> to vector<32x8xbf16>
    %c0_14 = arith.constant 0 : index
    %c0_15 = arith.constant 0 : index
    %c0_16 = arith.constant 0 : index
    %15 = vector.load %arg6[%c0_14, %c0_15, %c0_16] : memref<4x32x8xbf16, #tpu.memory_space<vmem>>, vector<1x32x8xbf16>
    %16 = vector.shape_cast %15 : vector<1x32x8xbf16> to vector<32x8xbf16>
    %c0_17 = arith.constant 0 : index
    %c0_18 = arith.constant 0 : index
    %c0_19 = arith.constant 0 : index
    %17 = vector.load %arg7[%c0_17, %c0_18, %c0_19] : memref<4x32x8xbf16, #tpu.memory_space<vmem>>, vector<1x32x8xbf16>
    %18 = vector.shape_cast %17 : vector<1x32x8xbf16> to vector<32x8xbf16>
    %c0_20 = arith.constant 0 : index
    %c0_21 = arith.constant 0 : index
    %c0_22 = arith.constant 0 : index
    %19 = vector.load %arg8[%c0_20, %c0_21, %c0_22] : memref<4x8x32xbf16, #tpu.memory_space<vmem>>, vector<1x8x32xbf16>
    %20 = vector.shape_cast %19 : vector<1x8x32xbf16> to vector<8x32xbf16>
    %cst_23 = arith.constant dense<0.000000e+00> : vector<16x8xf32>
    %21 = tpu.matmul %2, %14, %cst_23 {dimension_numbers = #tpu.dot_dimension_numbers<[1], [0], [0], [1], [0, 0, 1, 1], [], []>} : vector<16x32xbf16>, vector<32x8xbf16>, vector<16x8xf32> -> vector<16x8xf32>
    %cst_24 = arith.constant 0.353553385 : f32
    %22 = vector.broadcast %cst_24 : f32 to vector<16x8xf32>
    %23 = arith.mulf %21, %22 : vector<16x8xf32>
    %cst_25 = arith.constant dense<0.000000e+00> : vector<16x8xf32>
    %24 = tpu.matmul %5, %16, %cst_25 {dimension_numbers = #tpu.dot_dimension_numbers<[1], [0], [0], [1], [0, 0, 1, 1], [], []>} : vector<16x32xbf16>, vector<32x8xbf16>, vector<16x8xf32> -> vector<16x8xf32>
    %cst_26 = arith.constant dense<0.000000e+00> : vector<16x8xf32>
    %25 = tpu.matmul %8, %18, %cst_26 {dimension_numbers = #tpu.dot_dimension_numbers<[1], [0], [0], [1], [0, 0, 1, 1], [], []>} : vector<16x32xbf16>, vector<32x8xbf16>, vector<16x8xf32> -> vector<16x8xf32>
    %26 = vector.shape_cast %23 : vector<16x8xf32> to vector<2x8x8xf32>
    %27 = arith.truncf %26 : vector<2x8x8xf32> to vector<2x8x8xbf16>
    %28 = vector.shape_cast %24 : vector<16x8xf32> to vector<2x8x8xf32>
    %29 = arith.truncf %28 : vector<2x8x8xf32> to vector<2x8x8xbf16>
    %30 = vector.shape_cast %25 : vector<16x8xf32> to vector<2x8x8xf32>
    %31 = arith.truncf %30 : vector<2x8x8xf32> to vector<2x8x8xbf16>
    "tpu.trace_start"() <{level = 10 : i32, message = "bqd,bkd->bqk"}> : () -> ()
    %cst_27 = arith.constant dense<0.000000e+00> : vector<2x8x8xf32>
    %32 = tpu.matmul %27, %29, %cst_27 {dimension_numbers = #tpu.dot_dimension_numbers<[2], [2], [1], [1], [0, 0, 0, 1, 1, 1], [0], [0]>} : vector<2x8x8xbf16>, vector<2x8x8xbf16>, vector<2x8x8xf32> -> vector<2x8x8xf32>
    %cst_28 = arith.constant -1.000000e+30 : f32
    "tpu.trace_stop"() : () -> ()
    %33 = vector.broadcast %cst_28 : f32 to vector<2x8x8xf32>
    %34 = arith.select %11, %32, %33 : vector<2x8x8xi1>, vector<2x8x8xf32>
    %cst_29 = arith.constant dense<0xFF800000> : vector<2x8xf32>
    %35 = vector.multi_reduction <maximumf>, %34, %cst_29 [2] : vector<2x8x8xf32> to vector<2x8xf32>
    %36 = vector.shape_cast %35 : vector<2x8xf32> to vector<2x8x1xf32>
    %37 = vector.broadcast %36 : vector<2x8x1xf32> to vector<2x8x8xf32>
    %38 = arith.subf %34, %37 : vector<2x8x8xf32>
    %39 = math.exp %38 : vector<2x8x8xf32>
    %cst_30 = arith.constant dense<0.000000e+00> : vector<2x8xf32>
    %40 = vector.multi_reduction <add>, %39, %cst_30 [2] : vector<2x8x8xf32> to vector<2x8xf32>
    %41 = vector.shape_cast %40 : vector<2x8xf32> to vector<2x8x1xf32>
    %42 = tpu.reciprocal %41 {approx = true} : vector<2x8x1xf32> -> vector<2x8x1xf32>
    %43 = vector.broadcast %42 : vector<2x8x1xf32> to vector<2x8x8xf32>
    %44 = arith.mulf %39, %43 : vector<2x8x8xf32>
    %45 = arith.truncf %44 : vector<2x8x8xf32> to vector<2x8x8xbf16>
    "tpu.trace_start"() <{level = 10 : i32, message = "bqk,bkd->bqd"}> : () -> ()
    %cst_31 = arith.constant dense<0.000000e+00> : vector<2x8x8xf32>
    %46 = tpu.matmul %45, %31, %cst_31 {dimension_numbers = #tpu.dot_dimension_numbers<[2], [1], [1], [2], [0, 0, 0, 1, 1, 2], [0], [0]>} : vector<2x8x8xbf16>, vector<2x8x8xbf16>, vector<2x8x8xf32> -> vector<2x8x8xf32>
    "tpu.trace_stop"() : () -> ()
    %47 = vector.shape_cast %46 : vector<2x8x8xf32> to vector<16x8xf32>
    %48 = arith.truncf %47 : vector<16x8xf32> to vector<16x8xbf16>
    %cst_32 = arith.constant dense<0.000000e+00> : vector<16x32xf32>
    %49 = tpu.matmul %48, %20, %cst_32 {dimension_numbers = #tpu.dot_dimension_numbers<[1], [0], [0], [1], [0, 0, 1, 1], [], []>} : vector<16x8xbf16>, vector<8x32xbf16>, vector<16x32xf32> -> vector<16x32xf32>
    %50 = arith.addf %12, %49 : vector<16x32xf32>
    %c1 = arith.constant 1 : index
    %c0_33 = arith.constant 0 : index
    %c0_34 = arith.constant 0 : index
    %51 = vector.load %arg5[%c1, %c0_33, %c0_34] : memref<4x32x8xbf16, #tpu.memory_space<vmem>>, vector<1x32x8xbf16>
    %52 = vector.shape_cast %51 : vector<1x32x8xbf16> to vector<32x8xbf16>
    %c1_35 = arith.constant 1 : index
    %c0_36 = arith.constant 0 : index
    %c0_37 = arith.constant 0 : index
    %53 = vector.load %arg6[%c1_35, %c0_36, %c0_37] : memref<4x32x8xbf16, #tpu.memory_space<vmem>>, vector<1x32x8xbf16>
    %54 = vector.shape_cast %53 : vector<1x32x8xbf16> to vector<32x8xbf16>
    %c1_38 = arith.constant 1 : index
    %c0_39 = arith.constant 0 : index
    %c0_40 = arith.constant 0 : index
    %55 = vector.load %arg7[%c1_38, %c0_39, %c0_40] : memref<4x32x8xbf16, #tpu.memory_space<vmem>>, vector<1x32x8xbf16>
    %56 = vector.shape_cast %55 : vector<1x32x8xbf16> to vector<32x8xbf16>
    %c1_41 = arith.constant 1 : index
    %c0_42 = arith.constant 0 : index
    %c0_43 = arith.constant 0 : index
    %57 = vector.load %arg8[%c1_41, %c0_42, %c0_43] : memref<4x8x32xbf16, #tpu.memory_space<vmem>>, vector<1x8x32xbf16>
    %58 = vector.shape_cast %57 : vector<1x8x32xbf16> to vector<8x32xbf16>
    %cst_44 = arith.constant dense<0.000000e+00> : vector<16x8xf32>
    %59 = tpu.matmul %2, %52, %cst_44 {dimension_numbers = #tpu.dot_dimension_numbers<[1], [0], [0], [1], [0, 0, 1, 1], [], []>} : vector<16x32xbf16>, vector<32x8xbf16>, vector<16x8xf32> -> vector<16x8xf32>
    %cst_45 = arith.constant 0.353553385 : f32
    %60 = vector.broadcast %cst_45 : f32 to vector<16x8xf32>
    %61 = arith.mulf %59, %60 : vector<16x8xf32>
    %cst_46 = arith.constant dense<0.000000e+00> : vector<16x8xf32>
    %62 = tpu.matmul %5, %54, %cst_46 {dimension_numbers = #tpu.dot_dimension_numbers<[1], [0], [0], [1], [0, 0, 1, 1], [], []>} : vector<16x32xbf16>, vector<32x8xbf16>, vector<16x8xf32> -> vector<16x8xf32>
    %cst_47 = arith.constant dense<0.000000e+00> : vector<16x8xf32>
    %63 = tpu.matmul %8, %56, %cst_47 {dimension_numbers = #tpu.dot_dimension_numbers<[1], [0], [0], [1], [0, 0, 1, 1], [], []>} : vector<16x32xbf16>, vector<32x8xbf16>, vector<16x8xf32> -> vector<16x8xf32>
    %64 = vector.shape_cast %61 : vector<16x8xf32> to vector<2x8x8xf32>
    %65 = arith.truncf %64 : vector<2x8x8xf32> to vector<2x8x8xbf16>
    %66 = vector.shape_cast %62 : vector<16x8xf32> to vector<2x8x8xf32>
    %67 = arith.truncf %66 : vector<2x8x8xf32> to vector<2x8x8xbf16>
    %68 = vector.shape_cast %63 : vector<16x8xf32> to vector<2x8x8xf32>
    %69 = arith.truncf %68 : vector<2x8x8xf32> to vector<2x8x8xbf16>
    "tpu.trace_start"() <{level = 10 : i32, message = "bqd,bkd->bqk"}> : () -> ()
    %cst_48 = arith.constant dense<0.000000e+00> : vector<2x8x8xf32>
    %70 = tpu.matmul %65, %67, %cst_48 {dimension_numbers = #tpu.dot_dimension_numbers<[2], [2], [1], [1], [0, 0, 0, 1, 1, 1], [0], [0]>} : vector<2x8x8xbf16>, vector<2x8x8xbf16>, vector<2x8x8xf32> -> vector<2x8x8xf32>
    %cst_49 = arith.constant -1.000000e+30 : f32
    "tpu.trace_stop"() : () -> ()
    %71 = vector.broadcast %cst_49 : f32 to vector<2x8x8xf32>
    %72 = arith.select %11, %70, %71 : vector<2x8x8xi1>, vector<2x8x8xf32>
    %cst_50 = arith.constant dense<0xFF800000> : vector<2x8xf32>
    %73 = vector.multi_reduction <maximumf>, %72, %cst_50 [2] : vector<2x8x8xf32> to vector<2x8xf32>
    %74 = vector.shape_cast %73 : vector<2x8xf32> to vector<2x8x1xf32>
    %75 = vector.broadcast %74 : vector<2x8x1xf32> to vector<2x8x8xf32>
    %76 = arith.subf %72, %75 : vector<2x8x8xf32>
    %77 = math.exp %76 : vector<2x8x8xf32>
    %cst_51 = arith.constant dense<0.000000e+00> : vector<2x8xf32>
    %78 = vector.multi_reduction <add>, %77, %cst_51 [2] : vector<2x8x8xf32> to vector<2x8xf32>
    %79 = vector.shape_cast %78 : vector<2x8xf32> to vector<2x8x1xf32>
    %80 = tpu.reciprocal %79 {approx = true} : vector<2x8x1xf32> -> vector<2x8x1xf32>
    %81 = vector.broadcast %80 : vector<2x8x1xf32> to vector<2x8x8xf32>
    %82 = arith.mulf %77, %81 : vector<2x8x8xf32>
    %83 = arith.truncf %82 : vector<2x8x8xf32> to vector<2x8x8xbf16>
    "tpu.trace_start"() <{level = 10 : i32, message = "bqk,bkd->bqd"}> : () -> ()
    %cst_52 = arith.constant dense<0.000000e+00> : vector<2x8x8xf32>
    %84 = tpu.matmul %83, %69, %cst_52 {dimension_numbers = #tpu.dot_dimension_numbers<[2], [1], [1], [2], [0, 0, 0, 1, 1, 2], [0], [0]>} : vector<2x8x8xbf16>, vector<2x8x8xbf16>, vector<2x8x8xf32> -> vector<2x8x8xf32>
    "tpu.trace_stop"() : () -> ()
    %85 = vector.shape_cast %84 : vector<2x8x8xf32> to vector<16x8xf32>
    %86 = arith.truncf %85 : vector<16x8xf32> to vector<16x8xbf16>
    %cst_53 = arith.constant dense<0.000000e+00> : vector<16x32xf32>
    %87 = tpu.matmul %86, %58, %cst_53 {dimension_numbers = #tpu.dot_dimension_numbers<[1], [0], [0], [1], [0, 0, 1, 1], [], []>} : vector<16x8xbf16>, vector<8x32xbf16>, vector<16x32xf32> -> vector<16x32xf32>
    %88 = arith.addf %50, %87 : vector<16x32xf32>
    %c2 = arith.constant 2 : index
    %c0_54 = arith.constant 0 : index
    %c0_55 = arith.constant 0 : index
    %89 = vector.load %arg5[%c2, %c0_54, %c0_55] : memref<4x32x8xbf16, #tpu.memory_space<vmem>>, vector<1x32x8xbf16>
    %90 = vector.shape_cast %89 : vector<1x32x8xbf16> to vector<32x8xbf16>
    %c2_56 = arith.constant 2 : index
    %c0_57 = arith.constant 0 : index
    %c0_58 = arith.constant 0 : index
    %91 = vector.load %arg6[%c2_56, %c0_57, %c0_58] : memref<4x32x8xbf16, #tpu.memory_space<vmem>>, vector<1x32x8xbf16>
    %92 = vector.shape_cast %91 : vector<1x32x8xbf16> to vector<32x8xbf16>
    %c2_59 = arith.constant 2 : index
    %c0_60 = arith.constant 0 : index
    %c0_61 = arith.constant 0 : index
    %93 = vector.load %arg7[%c2_59, %c0_60, %c0_61] : memref<4x32x8xbf16, #tpu.memory_space<vmem>>, vector<1x32x8xbf16>
    %94 = vector.shape_cast %93 : vector<1x32x8xbf16> to vector<32x8xbf16>
    %c2_62 = arith.constant 2 : index
    %c0_63 = arith.constant 0 : index
    %c0_64 = arith.constant 0 : index
    %95 = vector.load %arg8[%c2_62, %c0_63, %c0_64] : memref<4x8x32xbf16, #tpu.memory_space<vmem>>, vector<1x8x32xbf16>
    %96 = vector.shape_cast %95 : vector<1x8x32xbf16> to vector<8x32xbf16>
    %cst_65 = arith.constant dense<0.000000e+00> : vector<16x8xf32>
    %97 = tpu.matmul %2, %90, %cst_65 {dimension_numbers = #tpu.dot_dimension_numbers<[1], [0], [0], [1], [0, 0, 1, 1], [], []>} : vector<16x32xbf16>, vector<32x8xbf16>, vector<16x8xf32> -> vector<16x8xf32>
    %cst_66 = arith.constant 0.353553385 : f32
    %98 = vector.broadcast %cst_66 : f32 to vector<16x8xf32>
    %99 = arith.mulf %97, %98 : vector<16x8xf32>
    %cst_67 = arith.constant dense<0.000000e+00> : vector<16x8xf32>
    %100 = tpu.matmul %5, %92, %cst_67 {dimension_numbers = #tpu.dot_dimension_numbers<[1], [0], [0], [1], [0, 0, 1, 1], [], []>} : vector<16x32xbf16>, vector<32x8xbf16>, vector<16x8xf32> -> vector<16x8xf32>
    %cst_68 = arith.constant dense<0.000000e+00> : vector<16x8xf32>
    %101 = tpu.matmul %8, %94, %cst_68 {dimension_numbers = #tpu.dot_dimension_numbers<[1], [0], [0], [1], [0, 0, 1, 1], [], []>} : vector<16x32xbf16>, vector<32x8xbf16>, vector<16x8xf32> -> vector<16x8xf32>
    %102 = vector.shape_cast %99 : vector<16x8xf32> to vector<2x8x8xf32>
    %103 = arith.truncf %102 : vector<2x8x8xf32> to vector<2x8x8xbf16>
    %104 = vector.shape_cast %100 : vector<16x8xf32> to vector<2x8x8xf32>
    %105 = arith.truncf %104 : vector<2x8x8xf32> to vector<2x8x8xbf16>
    %106 = vector.shape_cast %101 : vector<16x8xf32> to vector<2x8x8xf32>
    %107 = arith.truncf %106 : vector<2x8x8xf32> to vector<2x8x8xbf16>
    "tpu.trace_start"() <{level = 10 : i32, message = "bqd,bkd->bqk"}> : () -> ()
    %cst_69 = arith.constant dense<0.000000e+00> : vector<2x8x8xf32>
    %108 = tpu.matmul %103, %105, %cst_69 {dimension_numbers = #tpu.dot_dimension_numbers<[2], [2], [1], [1], [0, 0, 0, 1, 1, 1], [0], [0]>} : vector<2x8x8xbf16>, vector<2x8x8xbf16>, vector<2x8x8xf32> -> vector<2x8x8xf32>
    %cst_70 = arith.constant -1.000000e+30 : f32
    "tpu.trace_stop"() : () -> ()
    %109 = vector.broadcast %cst_70 : f32 to vector<2x8x8xf32>
    %110 = arith.select %11, %108, %109 : vector<2x8x8xi1>, vector<2x8x8xf32>
    %cst_71 = arith.constant dense<0xFF800000> : vector<2x8xf32>
    %111 = vector.multi_reduction <maximumf>, %110, %cst_71 [2] : vector<2x8x8xf32> to vector<2x8xf32>
    %112 = vector.shape_cast %111 : vector<2x8xf32> to vector<2x8x1xf32>
    %113 = vector.broadcast %112 : vector<2x8x1xf32> to vector<2x8x8xf32>
    %114 = arith.subf %110, %113 : vector<2x8x8xf32>
    %115 = math.exp %114 : vector<2x8x8xf32>
    %cst_72 = arith.constant dense<0.000000e+00> : vector<2x8xf32>
    %116 = vector.multi_reduction <add>, %115, %cst_72 [2] : vector<2x8x8xf32> to vector<2x8xf32>
    %117 = vector.shape_cast %116 : vector<2x8xf32> to vector<2x8x1xf32>
    %118 = tpu.reciprocal %117 {approx = true} : vector<2x8x1xf32> -> vector<2x8x1xf32>
    %119 = vector.broadcast %118 : vector<2x8x1xf32> to vector<2x8x8xf32>
    %120 = arith.mulf %115, %119 : vector<2x8x8xf32>
    %121 = arith.truncf %120 : vector<2x8x8xf32> to vector<2x8x8xbf16>
    "tpu.trace_start"() <{level = 10 : i32, message = "bqk,bkd->bqd"}> : () -> ()
    %cst_73 = arith.constant dense<0.000000e+00> : vector<2x8x8xf32>
    %122 = tpu.matmul %121, %107, %cst_73 {dimension_numbers = #tpu.dot_dimension_numbers<[2], [1], [1], [2], [0, 0, 0, 1, 1, 2], [0], [0]>} : vector<2x8x8xbf16>, vector<2x8x8xbf16>, vector<2x8x8xf32> -> vector<2x8x8xf32>
    "tpu.trace_stop"() : () -> ()
    %123 = vector.shape_cast %122 : vector<2x8x8xf32> to vector<16x8xf32>
    %124 = arith.truncf %123 : vector<16x8xf32> to vector<16x8xbf16>
    %cst_74 = arith.constant dense<0.000000e+00> : vector<16x32xf32>
    %125 = tpu.matmul %124, %96, %cst_74 {dimension_numbers = #tpu.dot_dimension_numbers<[1], [0], [0], [1], [0, 0, 1, 1], [], []>} : vector<16x8xbf16>, vector<8x32xbf16>, vector<16x32xf32> -> vector<16x32xf32>
    %126 = arith.addf %88, %125 : vector<16x32xf32>
    %c3 = arith.constant 3 : index
    %c0_75 = arith.constant 0 : index
    %c0_76 = arith.constant 0 : index
    %127 = vector.load %arg5[%c3, %c0_75, %c0_76] : memref<4x32x8xbf16, #tpu.memory_space<vmem>>, vector<1x32x8xbf16>
    %128 = vector.shape_cast %127 : vector<1x32x8xbf16> to vector<32x8xbf16>
    %c3_77 = arith.constant 3 : index
    %c0_78 = arith.constant 0 : index
    %c0_79 = arith.constant 0 : index
    %129 = vector.load %arg6[%c3_77, %c0_78, %c0_79] : memref<4x32x8xbf16, #tpu.memory_space<vmem>>, vector<1x32x8xbf16>
    %130 = vector.shape_cast %129 : vector<1x32x8xbf16> to vector<32x8xbf16>
    %c3_80 = arith.constant 3 : index
    %c0_81 = arith.constant 0 : index
    %c0_82 = arith.constant 0 : index
    %131 = vector.load %arg7[%c3_80, %c0_81, %c0_82] : memref<4x32x8xbf16, #tpu.memory_space<vmem>>, vector<1x32x8xbf16>
    %132 = vector.shape_cast %131 : vector<1x32x8xbf16> to vector<32x8xbf16>
    %c3_83 = arith.constant 3 : index
    %c0_84 = arith.constant 0 : index
    %c0_85 = arith.constant 0 : index
    %133 = vector.load %arg8[%c3_83, %c0_84, %c0_85] : memref<4x8x32xbf16, #tpu.memory_space<vmem>>, vector<1x8x32xbf16>
    %134 = vector.shape_cast %133 : vector<1x8x32xbf16> to vector<8x32xbf16>
    %cst_86 = arith.constant dense<0.000000e+00> : vector<16x8xf32>
    %135 = tpu.matmul %2, %128, %cst_86 {dimension_numbers = #tpu.dot_dimension_numbers<[1], [0], [0], [1], [0, 0, 1, 1], [], []>} : vector<16x32xbf16>, vector<32x8xbf16>, vector<16x8xf32> -> vector<16x8xf32>
    %cst_87 = arith.constant 0.353553385 : f32
    %136 = vector.broadcast %cst_87 : f32 to vector<16x8xf32>
    %137 = arith.mulf %135, %136 : vector<16x8xf32>
    %cst_88 = arith.constant dense<0.000000e+00> : vector<16x8xf32>
    %138 = tpu.matmul %5, %130, %cst_88 {dimension_numbers = #tpu.dot_dimension_numbers<[1], [0], [0], [1], [0, 0, 1, 1], [], []>} : vector<16x32xbf16>, vector<32x8xbf16>, vector<16x8xf32> -> vector<16x8xf32>
    %cst_89 = arith.constant dense<0.000000e+00> : vector<16x8xf32>
    %139 = tpu.matmul %8, %132, %cst_89 {dimension_numbers = #tpu.dot_dimension_numbers<[1], [0], [0], [1], [0, 0, 1, 1], [], []>} : vector<16x32xbf16>, vector<32x8xbf16>, vector<16x8xf32> -> vector<16x8xf32>
    %140 = vector.shape_cast %137 : vector<16x8xf32> to vector<2x8x8xf32>
    %141 = arith.truncf %140 : vector<2x8x8xf32> to vector<2x8x8xbf16>
    %142 = vector.shape_cast %138 : vector<16x8xf32> to vector<2x8x8xf32>
    %143 = arith.truncf %142 : vector<2x8x8xf32> to vector<2x8x8xbf16>
    %144 = vector.shape_cast %139 : vector<16x8xf32> to vector<2x8x8xf32>
    %145 = arith.truncf %144 : vector<2x8x8xf32> to vector<2x8x8xbf16>
    "tpu.trace_start"() <{level = 10 : i32, message = "bqd,bkd->bqk"}> : () -> ()
    %cst_90 = arith.constant dense<0.000000e+00> : vector<2x8x8xf32>
    %146 = tpu.matmul %141, %143, %cst_90 {dimension_numbers = #tpu.dot_dimension_numbers<[2], [2], [1], [1], [0, 0, 0, 1, 1, 1], [0], [0]>} : vector<2x8x8xbf16>, vector<2x8x8xbf16>, vector<2x8x8xf32> -> vector<2x8x8xf32>
    %cst_91 = arith.constant -1.000000e+30 : f32
    "tpu.trace_stop"() : () -> ()
    %147 = vector.broadcast %cst_91 : f32 to vector<2x8x8xf32>
    %148 = arith.select %11, %146, %147 : vector<2x8x8xi1>, vector<2x8x8xf32>
    %cst_92 = arith.constant dense<0xFF800000> : vector<2x8xf32>
    %149 = vector.multi_reduction <maximumf>, %148, %cst_92 [2] : vector<2x8x8xf32> to vector<2x8xf32>
    %150 = vector.shape_cast %149 : vector<2x8xf32> to vector<2x8x1xf32>
    %151 = vector.broadcast %150 : vector<2x8x1xf32> to vector<2x8x8xf32>
    %152 = arith.subf %148, %151 : vector<2x8x8xf32>
    %153 = math.exp %152 : vector<2x8x8xf32>
    %cst_93 = arith.constant dense<0.000000e+00> : vector<2x8xf32>
    %154 = vector.multi_reduction <add>, %153, %cst_93 [2] : vector<2x8x8xf32> to vector<2x8xf32>
    %155 = vector.shape_cast %154 : vector<2x8xf32> to vector<2x8x1xf32>
    %156 = tpu.reciprocal %155 {approx = true} : vector<2x8x1xf32> -> vector<2x8x1xf32>
    %157 = vector.broadcast %156 : vector<2x8x1xf32> to vector<2x8x8xf32>
    %158 = arith.mulf %153, %157 : vector<2x8x8xf32>
    %159 = arith.truncf %158 : vector<2x8x8xf32> to vector<2x8x8xbf16>
    "tpu.trace_start"() <{level = 10 : i32, message = "bqk,bkd->bqd"}> : () -> ()
    %cst_94 = arith.constant dense<0.000000e+00> : vector<2x8x8xf32>
    %160 = tpu.matmul %159, %145, %cst_94 {dimension_numbers = #tpu.dot_dimension_numbers<[2], [1], [1], [2], [0, 0, 0, 1, 1, 2], [0], [0]>} : vector<2x8x8xbf16>, vector<2x8x8xbf16>, vector<2x8x8xf32> -> vector<2x8x8xf32>
    "tpu.trace_stop"() : () -> ()
    %161 = vector.shape_cast %160 : vector<2x8x8xf32> to vector<16x8xf32>
    %162 = arith.truncf %161 : vector<16x8xf32> to vector<16x8xbf16>
    %cst_95 = arith.constant dense<0.000000e+00> : vector<16x32xf32>
    %163 = tpu.matmul %162, %134, %cst_95 {dimension_numbers = #tpu.dot_dimension_numbers<[1], [0], [0], [1], [0, 0, 1, 1], [], []>} : vector<16x8xbf16>, vector<8x32xbf16>, vector<16x32xf32> -> vector<16x32xf32>
    %164 = arith.addf %126, %163 : vector<16x32xf32>
    %165 = vector.shape_cast %164 : vector<16x32xf32> to vector<2x8x32xf32>
    %c0_96 = arith.constant 0 : index
    %c0_97 = arith.constant 0 : index
    %c0_98 = arith.constant 0 : index
    %166 = vector.load %arg9[%c0_96, %c0_97, %c0_98] : memref<2x8x32xf32, #tpu.memory_space<vmem>>, vector<2x8x32xf32>
    tpu.vector_store %arg9[%c0_96, %c0_97, %c0_98], %165 {strides = array<i32>} : memref<2x8x32xf32, #tpu.memory_space<vmem>>, vector<2x8x32xf32>,
    return
  }
  func.func @transform_0(%arg0: i32) -> (i32, i32, i32) {
    %c0_i32 = arith.constant 0 : i32
    %c0_i32_0 = arith.constant 0 : i32
    %c0_i32_1 = arith.constant 0 : i32
    return %arg0, %c0_i32, %c0_i32_0 : i32, i32, i32
  }
  func.func @transform_1(%arg0: i32) -> (i32, i32, i32) {
    %c0_i32 = arith.constant 0 : i32
    %c0_i32_0 = arith.constant 0 : i32
    %c0_i32_1 = arith.constant 0 : i32
    return %arg0, %c0_i32, %c0_i32_0 : i32, i32, i32
  }
  func.func @transform_2(%arg0: i32) -> (i32, i32, i32) {
    %c0_i32 = arith.constant 0 : i32
    %c0_i32_0 = arith.constant 0 : i32
    %c0_i32_1 = arith.constant 0 : i32
    return %arg0, %c0_i32, %c0_i32_0 : i32, i32, i32
  }
  func.func @transform_3(%arg0: i32) -> (i32, i32, i32) {
    %c0_i32 = arith.constant 0 : i32
    %c0_i32_0 = arith.constant 0 : i32
    %c0_i32_1 = arith.constant 0 : i32
    return %arg0, %c0_i32, %c0_i32_0 : i32, i32, i32
  }
  func.func @transform_4(%arg0: i32) -> (i32, i32, i32) {
    %c0_i32 = arith.constant 0 : i32
    %c0_i32_0 = arith.constant 0 : i32
    %c0_i32_1 = arith.constant 0 : i32
    %c0_i32_2 = arith.constant 0 : i32
    return %c0_i32, %c0_i32_0, %c0_i32_1 : i32, i32, i32
  }
  func.func @transform_5(%arg0: i32) -> (i32, i32, i32) {
    %c0_i32 = arith.constant 0 : i32
    %c0_i32_0 = arith.constant 0 : i32
    %c0_i32_1 = arith.constant 0 : i32
    %c0_i32_2 = arith.constant 0 : i32
    return %c0_i32, %c0_i32_0, %c0_i32_1 : i32, i32, i32
  }
  func.func @transform_6(%arg0: i32) -> (i32, i32, i32) {
    %c0_i32 = arith.constant 0 : i32
    %c0_i32_0 = arith.constant 0 : i32
    %c0_i32_1 = arith.constant 0 : i32
    %c0_i32_2 = arith.constant 0 : i32
    return %c0_i32, %c0_i32_0, %c0_i32_1 : i32, i32, i32
  }
  func.func @transform_7(%arg0: i32) -> (i32, i32, i32) {
    %c0_i32 = arith.constant 0 : i32
    %c0_i32_0 = arith.constant 0 : i32
    %c0_i32_1 = arith.constant 0 : i32
    %c0_i32_2 = arith.constant 0 : i32
    return %c0_i32, %c0_i32_0, %c0_i32_1 : i32, i32, i32
  }
  func.func @transform_8(%arg0: i32) -> (i32, i32, i32) {
    %c0_i32 = arith.constant 0 : i32
    %c0_i32_0 = arith.constant 0 : i32
    %c0_i32_1 = arith.constant 0 : i32
    return %arg0, %c0_i32, %c0_i32_0 : i32, i32, i32
  }
}

</mosaic_0001>

<bundles_post_ra>
// kernel: tpu_custom_call.1
= control target key start
LH: loop header
LB: loop body
LE: loop exit
PB: predicated region body
PF: predicated region fallthrough
CT: control target
= control target key end

     0   :  { %v2326_v1 = vmov 0.0   ;;  %vm2327_vm0 = vmmov 0   ;;  %vm69_vm1 = vcmask 261120   ;;  %s2723_s0 = inlined_call_operand.vmem [shape: f32[2,8,32], index: 0, kind: input, shape index: {}]   ;;  %s2724_s1 = inlined_call_operand.vmem [shape: f32[2,8,32], index: 1, kind: input, shape index: {}]   ;;  %s2725_s2 = inlined_call_operand.vmem [shape: f32[2,8,32], index: 2, kind: input, shape index: {}]   ;;  %s2726_s3 = inlined_call_operand.vmem [shape: s32[2,8,8], index: 3, kind: input, shape index: {}]   ;;  %s2727_s4 = inlined_call_operand.vmem [shape: bf16[4,32,8], index: 4, kind: input, shape index: {}]   ;;  %s2728_s5 = inlined_call_operand.vmem [shape: bf16[4,32,8], index: 5, kind: input, shape index: {}]   ;;  %s2729_s6 = inlined_call_operand.vmem [shape: bf16[4,32,8], index: 6, kind: input, shape index: {}]   ;;  %s2730_s7 = inlined_call_operand.vmem [shape: bf16[4,8,32], index: 7, kind: input, shape index: {}]   ;;  %s2731_s8 = inlined_call_operand.hbm [shape: f32[2,8,32], index: 8, kind: output, shape index: {}]  }
   0x1   :  { %v2246_v0 = vld [vmem:[%s2727_s4] sm:$0xff]   ;;  %2013 = vmatprep.subr.bf16.mxu1 %v2326_v1  ;;  %v2247_v2 = vld [vmem:[%s2727_s4 + $0x8] sm:$0xff]   ;;  %2029 = vmatprep.subr.bf16.mxu0 %v2326_v1 }
   0x2   :  { %2014 = vmatpush3.bf16.msra.mxu1 %v2246_v0  ;;  %2017 = vmatprep.mubr.msk.bf16.mxu1 %vm2327_vm0, %v2326_v1  ;;  %v31_v3 = vld [vmem:[%s2723_s0] sm:$0xff]  ;;  %v32_v4 = vld [vmem:[%s2723_s0 + $0x8] sm:$0xff] }
   0x3   :  { %2015 = vmatprep.subr.bf16.mxu1 %v2326_v1  ;;  %2033 = vmatprep.mubr.msk.bf16.mxu0 %vm2327_vm0, %v2326_v1  ;;  %v2395_v5 = vpack.c.bf16 %v32_v4, %v31_v3  ;;  %v2248_v6 = vld [vmem:[%s2728_s5] sm:$0xff]   ;;  %v2249_v7 = vld [vmem:[%s2728_s5 + $0x8] sm:$0xff]  }
   0x4   :  { %v34_v8 = vld [vmem:[%s2724_s1] sm:$0xff]  ;;  %v35_v9 = vld [vmem:[%s2724_s1 + $0x8] sm:$0xff] }
   0x5   :  { %v2415_v10 = vpack.c.bf16 %v35_v9, %v34_v8 }
   0x6   :  { %2016 = vmatpush3.bf16.msra.mxu1 %v2247_v2 }
   0x7   :  { %2021 = vmatprep.subr.bf16.mxu1 %v2326_v1 }
   0x9   :  { %2018 = vmatmul.mubr.msk.bf16.vlgmr.msra.gmra.mrb[0].mxu1 %vm69_vm1, %v2395_v5 }
   0xa   :  { %2022 = vmatpush3.bf16.msra.mxu1 %v2248_v6  ;;  %2025 = vmatprep.mubr.msk.bf16.mxu1 %vm2327_vm0, %v2326_v1 }
   0xb   :  { %2023 = vmatprep.subr.bf16.mxu1 %v2326_v1 }
   0xe   :  { %2024 = vmatpush3.bf16.msra.mxu1 %v2249_v7 }
   0xf   :  { %2037 = vmatprep.subr.bf16.mxu1 %v2326_v1 }
  0x11   :  { %2026 = vmatmul.mubr.msk.bf16.vlgmr.msra.gmra.mrb[4].mxu1 %vm69_vm1, %v2415_v10 }
  0x12   :  { %2039 = vmatprep.mubr.msk.bf16.mxu1 %vm2327_vm0, %v2326_v1 }
  0x13   :  { %13 = vsyncpa [#allocation3], 0  ;;  %v2250_v11 = vld [vmem:[%s2729_s6] sm:$0xff]   ;;  %v2251_v12 = vld [vmem:[%s2729_s6 + $0x8] sm:$0xff]   ;;  %vm234_vm2 = vcmask 64512   ;;  %vm356_vm3 = vcmask 1043456  }
  0x14   :  { %2030 = vmatpush3.bf16.msra.mxu0 %v2250_v11  ;;  %v37_v13 = vld [vmem:[%s2725_s2] sm:$0xff]  ;;  %v38_v14 = vld [vmem:[%s2725_s2 + $0x8] sm:$0xff]  ;;  %v2252_v6 = vld [vmem:[%s2728_s5 + $0x10] sm:$0xff]   ;;  %s2328_s20 = smov [#allocation2]  }
  0x15   :  { %2031 = vmatprep.subr.bf16.mxu0 %v2326_v1  ;;  %v2436_v15 = vpack.c.bf16 %v38_v14, %v37_v13  ;;  %v2459_v40 = vld [vmem:[%s2726_s3 + $0x8] sm:$0xff]  ;;  %v2464_v41 = vld [vmem:[%s2726_s3] sm:$0xff]  ;;  %v2253_v11 = vld [vmem:[%s2727_s4 + $0x10] sm:$0xff]   ;;  %s1831_s21 = sshll.u32 %s2328_s20, 4  ;;  %s1832_s21 = int_to_ptr.vmem [resolvable:$true] %s1831_s21 }
  0x16   :  { %vm43_vm4 = vcmp.ne.s32.totalorder %v2459_v40, 0  ;;  %vm42_vm5 = vcmp.ne.s32.totalorder %v2464_v41, 0  ;;  %v2255_v14 = vld [vmem:[%s2727_s4 + $0x18] sm:$0xff]   ;;  %p2307_p1 = scmp.lt.s32.totalorder %s1832_s21, %s1832_s21 }
  0x18   :  { %2032 = vmatpush3.bf16.msra.mxu0 %v2251_v12  ;;  %v2254_v12 = vld [vmem:[%s2728_s5 + $0x18] sm:$0xff]  }
  0x19   :  { %2043 = vmatprep.subr.bf16.mxu0 %v2326_v1 }
  0x1b   :  { %2034 = vmatmul.mubr.msk.bf16.vlgmr.msra.gmra.mrb[0].mxu0 %vm69_vm1, %v2436_v15 }
  0x1c   :  { %2045 = vmatprep.mubr.msk.bf16.mxu0 %vm2327_vm0, %v2326_v1 }
  0xdc   :  { %v107_v16 = vpop.f32.mrb[0].mxu1 }
  0xdd   :  { %v2019_v17 = vpop.f32.mrb[1].mxu1  ;;  %v114_v27 = vmul.f32 0.35355338, %v107_v16  ;;  %v2256_v16 = vld [vmem:[%s2729_s6 + $0x10] sm:$0xff]  }
  0xde   :  { %v110_v18 = vpop.f32.mrb[2].mxu1  ;;  %v2257_v17 = vld [vmem:[%s2729_s6 + $0x18] sm:$0xff]  }
  0xdf   :  { %v2020_v19 = vpop.f32.mrb[3].mxu1  ;;  %v115_v29 = vmul.f32 0.35355338, %v110_v18  ;;  %v228_v30 = vpack.c.bf16 %v114_v27, %v114_v27 }
  0xe1   :  { %v229_v31 = vpack.c.bf16 %v115_v29, %v115_v29 }
  0xe4   :  { %v165_v20 = vpop.f32.mrb[4].mxu1 }
  0xe5   :  { %v230_v21 = vpack.c.bf16 %v165_v20, %v165_v20  ;;  %v2027_v22 = vpop.f32.mrb[5].mxu1 }
  0xe6   :  { %v168_v23 = vpop.f32.mrb[6].mxu1 }
  0xe7   :  { %v239_v24 = vsel %vm234_vm2, %v230_v21, 0  ;;  %v231_v25 = vpack.c.bf16 %v168_v23, %v168_v23  ;;  %v2028_v26 = vpop.f32.mrb[7].mxu1 }
  0xe8   :  { %2038 = vmatpush3.bf16.xpose.msra.mxu1 %v239_v24 }
  0xe9   :  { %v285_v28 = vsel %vm234_vm2, %v231_v25, 0  ;;  %2049 = vmatprep.subr.bf16.mxu1 %v2326_v1 }
  0xea   :  { %2044 = vmatpush3.bf16.xpose.msra.mxu0 %v285_v28 }
  0xeb   :  { %2055 = vmatprep.subr.bf16.mxu0 %v2326_v1 }
  0xee   :  { %v221_v32 = vpop.f32.mrb[0].mxu0 }
  0xef   :  { %2040 = vmatmul.mubr.msk.bf16.vlgmr.msra.gmra.mrb[8].mxu1 %vm234_vm2, %v228_v30  ;;  %v232_v33 = vpack.c.bf16 %v221_v32, %v221_v32  ;;  %v2035_v34 = vpop.f32.mrb[1].mxu0 }
  0xf0   :  { %2051 = vmatprep.mubr.msk.bf16.mxu1 %vm2327_vm0, %v2326_v1  ;;  %v224_v35 = vpop.f32.mrb[2].mxu0 }
  0xf1   :  { %2046 = vmatmul.mubr.msk.bf16.vlgmr.msra.gmra.mrb[4].mxu0 %vm234_vm2, %v229_v31  ;;  %v358_v36 = vsel %vm356_vm3, %v232_v33, 0  ;;  %v233_v37 = vpack.c.bf16 %v224_v35, %v224_v35  ;;  %v2036_v38 = vpop.f32.mrb[3].mxu0 }
  0xf2   :  { %2057 = vmatprep.mubr.msk.bf16.mxu0 %vm2327_vm0, %v2326_v1  ;;  %2050 = vmatpush3.bf16.msra.mxu1 %v358_v36 }
  0xf3   :  { %v404_v39 = vsel %vm356_vm3, %v233_v37, 0  ;;  %2061 = vmatprep.subr.bf16.mxu1 %v2326_v1 }
  0xf4   :  { %2056 = vmatpush3.bf16.msra.mxu0 %v404_v39 }
  0xf5   :  { %2069 = vmatprep.subr.bf16.mxu0 %v2326_v1 }
 0x1c2   :  { %v275_v42 = vpop.f32.mrb[8].mxu1 }
 0x1c3   :  { %v2041_v43 = vpop.f32.mrb[9].mxu1  ;;  %v327_v51 = vsel %vm42_vm5, %v275_v42, -1e+30 }
 0x1c4   :  { %v278_v44 = vpop.f32.mrb[10].mxu1  ;;  %v321_v45 = vpop.f32.mrb[4].mxu0  ;;  %v329_v53 = vsel %vm234_vm2, %v327_v51, -inf }
 0x1c5   :  { %v328_v46 = vsel %vm43_vm4, %v321_v45, -1e+30  ;;  %v2042_v47 = vpop.f32.mrb[11].mxu1  ;;  %v2047_v48 = vpop.f32.mrb[5].mxu0 }
 0x1c6   :  { %v324_v49 = vpop.f32.mrb[6].mxu0  ;;  %v332_v50 = vsel %vm234_vm2, %v328_v46, -inf }
 0x1c7   :  { %333 = vmax.xlane.f32.xlu0 %v332_v50  ;;  %v2048_v52 = vpop.f32.mrb[7].mxu0 }
 0x1cb   :  { %330 = vmax.xlane.f32.xlu0 %v329_v53 }
 0x254   :  { %v334_v54 = vpop.xlane.xlu0 %333 }
 0x255   :  { %v336_v55 = vsub.f32 %v328_v46, %v334_v54 }
 0x257   :  { %v339_v56 = vmul.f32 1.442695, %v336_v55 }
 0x258   :  { %v331_v57 = vpop.xlane.xlu0 %330 }
 0x259   :  { %2270 = vpow2.f32 %v339_v56  ;;  %v335_v58 = vsub.f32 %v327_v51, %v331_v57 }
 0x25b   :  { %v337_v59 = vmul.f32 1.442695, %v335_v58 }
 0x25d   :  { %2272 = vpow2.f32 %v337_v59 }
 0x263   :  { %v2271_v60 = vpop.eup %2270 }
 0x264   :  { %v344_v61 = vsel %vm234_vm2, %v2271_v60, 0.0 }
 0x265   :  { %345 = vadd.xlane.f32.xlu1 %v344_v61 }
 0x267   :  { %v2273_v62 = vpop.eup %2272 }
 0x268   :  { %v341_v63 = vsel %vm234_vm2, %v2273_v62, 0.0 }
 0x269   :  { %342 = vadd.xlane.f32.xlu1 %v341_v63 }
 0x2f2   :  { %v346_v0 = vpop.xlane.xlu1 %345 }
 0x2f3   :  { %2274 = vrcp.f32 %v346_v0 }
 0x2f6   :  { %v343_v2 = vpop.xlane.xlu1 %342 }
 0x2f7   :  { %2276 = vrcp.f32 %v343_v2 }
 0x2fd   :  { %v2275_v3 = vpop.eup %2274 }
 0x2fe   :  { %v350_v4 = vmul.f32 %v2275_v3, %v2271_v60 }
 0x300   :  { %v352_v7 = vpack.c.bf16 %v350_v4, %v350_v4 }
 0x301   :  { %v2277_v8 = vpop.eup %2276 }
 0x302   :  { %v349_v9 = vmul.f32 %v2277_v8, %v2273_v62  ;;  %2058 = vmatmul.mubr.msk.bf16.vlgmr.msra.gmra.mrb[8].mxu0 %vm234_vm2, %v352_v7 }
 0x303   :  { %2070 = vmatpush3.bf16.msra.mxu0 %v2252_v6  ;;  %2073 = vmatprep.mubr.msk.bf16.mxu0 %vm2327_vm0, %v2326_v1 }
 0x304   :  { %v351_v13 = vpack.c.bf16 %v349_v9, %v349_v9  ;;  %2071 = vmatprep.subr.bf16.mxu0 %v2326_v1 }
 0x306   :  { %2052 = vmatmul.mubr.msk.bf16.vlgmr.msra.gmra.mrb[12].mxu1 %vm234_vm2, %v351_v13 }
 0x307   :  { %2062 = vmatpush3.bf16.msra.mxu1 %v2253_v11  ;;  %2072 = vmatpush3.bf16.msra.mxu0 %v2254_v12 }
 0x308   :  { %2063 = vmatprep.subr.bf16.mxu1 %v2326_v1  ;;  %2065 = vmatprep.mubr.msk.bf16.mxu1 %vm2327_vm0, %v2326_v1 }
 0x309   :  { %2085 = vmatprep.subr.bf16.mxu0 %v2326_v1 }
 0x30a   :  { %2074 = vmatmul.mubr.msk.bf16.vlgmr.msra.gmra.mrb[12].mxu0 %vm69_vm1, %v2415_v10 }
 0x30b   :  { %2064 = vmatpush3.bf16.msra.mxu1 %v2255_v14  ;;  %2087 = vmatprep.mubr.msk.bf16.mxu0 %vm2327_vm0, %v2326_v1 }
 0x30c   :  { %2077 = vmatprep.subr.bf16.mxu1 %v2326_v1 }
 0x30e   :  { %2066 = vmatmul.mubr.msk.bf16.vlgmr.msra.gmra.mrb[16].mxu1 %vm69_vm1, %v2395_v5 }
 0x30f   :  { %2081 = vmatprep.mubr.msk.bf16.mxu1 %vm2327_vm0, %v2326_v1  ;;  %2078 = vmatpush3.bf16.msra.mxu1 %v2256_v16 }
 0x310   :  { %2079 = vmatprep.subr.bf16.mxu1 %v2326_v1 }
 0x313   :  { %2080 = vmatpush3.bf16.msra.mxu1 %v2257_v17 }
 0x314   :  { %2091 = vmatprep.subr.bf16.mxu1 %v2326_v1 }
 0x316   :  { %2082 = vmatmul.mubr.msk.bf16.vlgmr.msra.gmra.mrb[20].mxu1 %vm69_vm1, %v2436_v15 }
 0x317   :  { %2093 = vmatprep.mubr.msk.bf16.mxu1 %vm2327_vm0, %v2326_v1 }
 0x3d5   :  { %v2518_v18 = vpop.f32.mrb[8].mxu0 }
 0x3d6   :  { %v2059_v19 = vpop.f32.mrb[9].mxu0 }
 0x3d7   :  { %v443_v20 = vpop.f32.mrb[10].mxu0  ;;  %v1867_v19 = vld [vmem:[%s2730_s7 + $0x4] sm:$0xf] }
 0x3d8   :  { %v2060_v21 = vpop.f32.mrb[11].mxu0 }
 0x3d9   :  { %v2520_v22 = vpop.f32.mrb[12].mxu1 }
 0x3da   :  { %v446_v23 = vpack.c.bf16 %v2518_v18, %v2520_v22  ;;  %v2053_v24 = vpop.f32.mrb[13].mxu1 }
 0x3db   :  { %v397_v25 = vpop.f32.mrb[14].mxu1 }
 0x3dc   :  { %v2054_v26 = vpop.f32.mrb[15].mxu1 }
 0x3dd   :  { %v565_v27 = vpop.f32.mrb[12].mxu0  ;;  %v846_v26 = vsel %vm356_vm3, %v1867_v19, 0 }
 0x3de   :  { %v627_v28 = vpack.c.bf16 %v565_v27, %v565_v27  ;;  %v2075_v29 = vpop.f32.mrb[13].mxu0  ;;  %v2258_v27 = vld [vmem:[%s2727_s4 + $0x20] sm:$0xff]  }
 0x3df   :  { %v568_v30 = vpop.f32.mrb[14].mxu0  ;;  %v2259_v29 = vld [vmem:[%s2727_s4 + $0x28] sm:$0xff]  }
 0x3e0   :  { %v635_v31 = vsel %vm234_vm2, %v627_v28, 0  ;;  %v628_v32 = vpack.c.bf16 %v568_v30, %v568_v30  ;;  %v2076_v33 = vpop.f32.mrb[15].mxu0  ;;  %v2260_v30 = vld [vmem:[%s2728_s5 + $0x20] sm:$0xff]  }
 0x3e1   :  { %v510_v34 = vpop.f32.mrb[16].mxu1  ;;  %2086 = vmatpush3.bf16.xpose.msra.mxu0 %v635_v31  ;;  %v2261_v31 = vld [vmem:[%s2728_s5 + $0x28] sm:$0xff]   ;;  %v56_v33 = vld [vmem:[%s2730_s7] sm:$0xf] }
 0x3e2   :  { %v681_v35 = vsel %vm234_vm2, %v628_v32, 0  ;;  %v517_v36 = vmul.f32 0.35355338, %v510_v34  ;;  %v2067_v37 = vpop.f32.mrb[17].mxu1  ;;  %2097 = vmatprep.subr.bf16.mxu0 %v2326_v1 }
 0x3e3   :  { %v513_v38 = vpop.f32.mrb[18].mxu1  ;;  %2092 = vmatpush3.bf16.xpose.msra.mxu1 %v681_v35 }
 0x3e4   :  { %v625_v39 = vpack.c.bf16 %v517_v36, %v517_v36  ;;  %v518_v42 = vmul.f32 0.35355338, %v513_v38  ;;  %v2068_v43 = vpop.f32.mrb[19].mxu1  ;;  %2103 = vmatprep.subr.bf16.mxu1 %v2326_v1 }
 0x3e6   :  { %v626_v44 = vpack.c.bf16 %v518_v42, %v518_v42  ;;  %v893_v42 = vsel %vm356_vm3, %v56_v33, 0 }
 0x3e8   :  { %2088 = vmatmul.mubr.msk.bf16.vlgmr.msra.gmra.mrb[16].mxu0 %vm234_vm2, %v625_v39 }
 0x3e9   :  { %2099 = vmatprep.mubr.msk.bf16.mxu0 %vm2327_vm0, %v2326_v1  ;;  %v618_v45 = vpop.f32.mrb[20].mxu1 }
 0x3ea   :  { %2094 = vmatmul.mubr.msk.bf16.vlgmr.msra.gmra.mrb[24].mxu1 %vm234_vm2, %v626_v44  ;;  %v629_v46 = vpack.c.bf16 %v618_v45, %v618_v45  ;;  %v2083_v47 = vpop.f32.mrb[21].mxu1 }
 0x3eb   :  { %2105 = vmatprep.mubr.msk.bf16.mxu1 %vm2327_vm0, %v2326_v1  ;;  %v621_v48 = vpop.f32.mrb[22].mxu1 }
 0x3ec   :  { %v753_v49 = vsel %vm356_vm3, %v629_v46, 0  ;;  %v630_v50 = vpack.c.bf16 %v621_v48, %v621_v48  ;;  %v2084_v51 = vpop.f32.mrb[23].mxu1 }
 0x3ed   :  { %2098 = vmatpush3.bf16.msra.mxu0 %v753_v49  ;;  %v2262_v49 = vld [vmem:[%s2729_s6 + $0x20] sm:$0xff]   ;;  %v2263_v51 = vld [vmem:[%s2729_s6 + $0x28] sm:$0xff]  }
 0x3ee   :  { %v799_v52 = vsel %vm356_vm3, %v630_v50, 0  ;;  %2109 = vmatprep.subr.bf16.mxu0 %v2326_v1 }
 0x3ef   :  { %2104 = vmatpush3.bf16.msra.mxu1 %v799_v52 }
 0x3f0   :  { %2121 = vmatprep.subr.bf16.mxu1 %v2326_v1 }
 0x4bb   :  { %v671_v53 = vpop.f32.mrb[16].mxu0 }
 0x4bc   :  { %v723_v54 = vsel %vm42_vm5, %v671_v53, -1e+30  ;;  %v2089_v55 = vpop.f32.mrb[17].mxu0 }
 0x4bd   :  { %v674_v56 = vpop.f32.mrb[18].mxu0  ;;  %v717_v57 = vpop.f32.mrb[24].mxu1  ;;  %v725_v58 = vsel %vm234_vm2, %v723_v54, -inf }
 0x4be   :  { %v724_v59 = vsel %vm43_vm4, %v717_v57, -1e+30  ;;  %726 = vmax.xlane.f32.xlu0 %v725_v58  ;;  %v2090_v60 = vpop.f32.mrb[19].mxu0  ;;  %v2095_v61 = vpop.f32.mrb[25].mxu1 }
 0x4bf   :  { %v720_v62 = vpop.f32.mrb[26].mxu1  ;;  %v728_v63 = vsel %vm234_vm2, %v724_v59, -inf }
 0x4c0   :  { %729 = vmax.xlane.f32.xlu1 %v728_v63  ;;  %v2096_v0 = vpop.f32.mrb[27].mxu1 }
 0x54b   :  { %v727_v2 = vpop.xlane.xlu0 %726 }
 0x54c   :  { %v731_v3 = vsub.f32 %v723_v54, %v727_v2 }
 0x54d   :  { %v730_v4 = vpop.xlane.xlu1 %729 }
 0x54e   :  { %v733_v6 = vmul.f32 1.442695, %v731_v3  ;;  %v732_v7 = vsub.f32 %v724_v59, %v730_v4 }
 0x550   :  { %2278 = vpow2.f32 %v733_v6  ;;  %v735_v8 = vmul.f32 1.442695, %v732_v7 }
 0x552   :  { %2280 = vpow2.f32 %v735_v8 }
 0x55a   :  { %v2279_v9 = vpop.eup %2278 }
 0x55b   :  { %v737_v11 = vsel %vm234_vm2, %v2279_v9, 0.0 }
 0x55c   :  { %v2281_v12 = vpop.eup %2280  ;;  %738 = vadd.xlane.f32.xlu0 %v737_v11 }
 0x55d   :  { %v740_v13 = vsel %vm234_vm2, %v2281_v12, 0.0 }
 0x55e   :  { %741 = vadd.xlane.f32.xlu1 %v740_v13 }
 0x5e9   :  { %v739_v14 = vpop.xlane.xlu0 %738 }
 0x5ea   :  { %2282 = vrcp.f32 %v739_v14 }
 0x5eb   :  { %v742_v16 = vpop.xlane.xlu1 %741 }
 0x5ec   :  { %2284 = vrcp.f32 %v742_v16 }
 0x5f4   :  { %v2283_v17 = vpop.eup %2282 }
 0x5f5   :  { %v745_v20 = vmul.f32 %v2283_v17, %v2279_v9 }
 0x5f6   :  { %v2285_v21 = vpop.eup %2284 }
 0x5f7   :  { %v746_v24 = vmul.f32 %v2285_v21, %v2281_v12  ;;  %v747_v25 = vpack.c.bf16 %v745_v20, %v745_v20 }
 0x5f9   :  { %2100 = vmatmul.mubr.msk.bf16.vlgmr.msra.gmra.mrb[20].mxu0 %vm234_vm2, %v747_v25  ;;  %v748_v28 = vpack.c.bf16 %v746_v24, %v746_v24 }
 0x5fa   :  { %2110 = vmatpush3.bf16.msra.mxu0 %v846_v26  ;;  %2111 = vmatprep.mubr.msk.bf16.mxu0 %vm2327_vm0, %v2326_v1 }
 0x5fb   :  { %2106 = vmatmul.mubr.msk.bf16.vlgmr.msra.gmra.mrb[28].mxu1 %vm234_vm2, %v748_v28  ;;  %2115 = vmatprep.subr.bf16.mxu0 %v2326_v1 }
 0x5fc   :  { %2122 = vmatpush3.bf16.msra.mxu1 %v2258_v27  ;;  %2125 = vmatprep.mubr.msk.bf16.mxu1 %vm2327_vm0, %v2326_v1 }
 0x5fd   :  { %2123 = vmatprep.subr.bf16.mxu1 %v2326_v1 }
 0x600   :  { %2124 = vmatpush3.bf16.msra.mxu1 %v2259_v29 }
 0x601   :  { %2129 = vmatprep.subr.bf16.mxu1 %v2326_v1 }
 0x603   :  { %2126 = vmatmul.mubr.msk.bf16.vlgmr.msra.gmra.mrb[32].mxu1 %vm69_vm1, %v2395_v5 }
 0x604   :  { %2130 = vmatpush3.bf16.msra.mxu1 %v2260_v30  ;;  %2133 = vmatprep.mubr.msk.bf16.mxu1 %vm2327_vm0, %v2326_v1 }
 0x605   :  { %2131 = vmatprep.subr.bf16.mxu1 %v2326_v1 }
 0x608   :  { %2132 = vmatpush3.bf16.msra.mxu1 %v2261_v31 }
 0x609   :  { %2145 = vmatprep.subr.bf16.mxu1 %v2326_v1 }
 0x60b   :  { %2134 = vmatmul.mubr.msk.bf16.vlgmr.msra.gmra.mrb[36].mxu1 %vm69_vm1, %v2415_v10 }
 0x60c   :  { %2147 = vmatprep.mubr.msk.bf16.mxu1 %vm2327_vm0, %v2326_v1 }
 0x6cc   :  { %v789_v32 = vpop.f32.mrb[20].mxu0 }
 0x6cd   :  { %v2101_v34 = vpop.f32.mrb[21].mxu0 }
 0x6ce   :  { %v792_v35 = vpop.f32.mrb[22].mxu0  ;;  %v835_v36 = vpop.f32.mrb[28].mxu1 }
 0x6cf   :  { %v841_v37 = vpack.c.bf16 %v835_v36, %v789_v32  ;;  %v2102_v38 = vpop.f32.mrb[23].mxu0  ;;  %v2107_v39 = vpop.f32.mrb[29].mxu1 }
 0x6d0   :  { %v838_v43 = vpop.f32.mrb[30].mxu1  ;;  %v2265_v39 = vld [vmem:[%s2727_s4 + $0x38] sm:$0xff]  }
 0x6d1   :  { %v2108_v44 = vpop.f32.mrb[31].mxu1  ;;  %2112 = vmatmul.mubr.msk.bf16.vlgmr.msra.gmra.mrb[24].mxu0 %vm234_vm2, %v841_v37  ;;  %v2264_v37 = vld [vmem:[%s2727_s4 + $0x30] sm:$0xff]  }
 0x6d2   :  { %2116 = vmatpush3.bf16.msra.mxu0 %v893_v42  ;;  %2117 = vmatprep.mubr.msk.bf16.mxu0 %vm2327_vm0, %v2326_v1  ;;  %v2266_v44 = vld [vmem:[%s2728_s5 + $0x30] sm:$0xff]  }
 0x6d3   :  { %2137 = vmatprep.subr.bf16.mxu0 %v2326_v1 }
 0x6d6   :  { %v999_v45 = vpop.f32.mrb[32].mxu1 }
 0x6d7   :  { %v2127_v46 = vpop.f32.mrb[33].mxu1  ;;  %v1006_v18 = vmul.f32 0.35355338, %v999_v45 }
 0x6d8   :  { %v1002_v47 = vpop.f32.mrb[34].mxu1  ;;  %v2267_v46 = vld [vmem:[%s2728_s5 + $0x38] sm:$0xff]  }
 0x6d9   :  { %v2128_v48 = vpop.f32.mrb[35].mxu1  ;;  %v1007_v58 = vmul.f32 0.35355338, %v1002_v47 }
 0x6db   :  { %v1115_v59 = vpack.c.bf16 %v1007_v58, %v1007_v58  ;;  %v2269_v58 = vld [vmem:[%s2729_s6 + $0x38] sm:$0xff]  }
 0x6dd   :  { %2118 = vmatmul.mubr.msk.bf16.vlgmr.msra.gmra.mrb[24].mxu0 %vm234_vm2, %v446_v23  ;;  %v1114_v23 = vpack.c.bf16 %v1006_v18, %v1006_v18 }
 0x6de   :  { %2138 = vmatpush3.bf16.msra.mxu0 %v2262_v49  ;;  %v1054_v50 = vpop.f32.mrb[36].mxu1  ;;  %2141 = vmatprep.mubr.msk.bf16.mxu0 %vm2327_vm0, %v2326_v1 }
 0x6df   :  { %v1116_v52 = vpack.c.bf16 %v1054_v50, %v1054_v50  ;;  %v2135_v53 = vpop.f32.mrb[37].mxu1  ;;  %2139 = vmatprep.subr.bf16.mxu0 %v2326_v1 }
 0x6e0   :  { %v1057_v54 = vpop.f32.mrb[38].mxu1 }
 0x6e1   :  { %v1124_v55 = vsel %vm234_vm2, %v1116_v52, 0  ;;  %v2136_v56 = vpop.f32.mrb[39].mxu1  ;;  %v1117_v22 = vpack.c.bf16 %v1057_v54, %v1057_v54 }
 0x6e2   :  { %2140 = vmatpush3.bf16.msra.mxu0 %v2263_v51  ;;  %2146 = vmatpush3.bf16.xpose.msra.mxu1 %v1124_v55 }
 0x6e3   :  { %2151 = vmatprep.subr.bf16.mxu0 %v2326_v1  ;;  %2157 = vmatprep.subr.bf16.mxu1 %v2326_v1  ;;  %v1170_v57 = vsel %vm234_vm2, %v1117_v22, 0 }
 0x6e5   :  { %2142 = vmatmul.mubr.msk.bf16.vlgmr.msra.gmra.mrb[28].mxu0 %vm69_vm1, %v2436_v15 }
 0x6e6   :  { %2153 = vmatprep.mubr.msk.bf16.mxu0 %vm2327_vm0, %v2326_v1 }
 0x6e9   :  { %2148 = vmatmul.mubr.msk.bf16.vlgmr.msra.gmra.mrb[40].mxu1 %vm234_vm2, %v1114_v23 }
 0x6ea   :  { %2159 = vmatprep.mubr.msk.bf16.mxu1 %vm2327_vm0, %v2326_v1 }
 0x6eb   :  { %2152 = vmatpush3.bf16.xpose.msra.mxu0 %v1170_v57 }
 0x6ec   :  { %2163 = vmatprep.subr.bf16.mxu0 %v2326_v1 }
 0x6f2   :  { %2154 = vmatmul.mubr.msk.bf16.vlgmr.msra.gmra.mrb[32].mxu0 %vm234_vm2, %v1115_v59 }
 0x6f3   :  { %2165 = vmatprep.mubr.msk.bf16.mxu0 %vm2327_vm0, %v2326_v1 }
 0x7b8   :  { %v1107_v60 = vpop.f32.mrb[28].mxu0 }
 0x7b9   :  { %v1118_v61 = vpack.c.bf16 %v1107_v60, %v1107_v60  ;;  %v2143_v62 = vpop.f32.mrb[29].mxu0 }
 0x7ba   :  { %v1110_v63 = vpop.f32.mrb[30].mxu0 }
 0x7bb   :  { %v1242_v0 = vsel %vm356_vm3, %v1118_v61, 0  ;;  %v1119_v2 = vpack.c.bf16 %v1110_v63, %v1110_v63  ;;  %v2144_v3 = vpop.f32.mrb[31].mxu0 }
 0x7bc   :  { %v1160_v4 = vpop.f32.mrb[40].mxu1  ;;  %2158 = vmatpush3.bf16.msra.mxu1 %v1242_v0 }
 0x7bd   :  { %v1288_v6 = vsel %vm356_vm3, %v1119_v2, 0  ;;  %v1212_v7 = vsel %vm42_vm5, %v1160_v4, -1e+30  ;;  %v2149_v8 = vpop.f32.mrb[41].mxu1  ;;  %2175 = vmatprep.subr.bf16.mxu1 %v2326_v1 }
 0x7be   :  { %v1163_v9 = vpop.f32.mrb[42].mxu1  ;;  %v1214_v11 = vsel %vm234_vm2, %v1212_v7, -inf  ;;  %2164 = vmatpush3.bf16.msra.mxu0 %v1288_v6 }
 0x7bf   :  { %1215 = vmax.xlane.f32.xlu0 %v1214_v11  ;;  %v2150_v12 = vpop.f32.mrb[43].mxu1  ;;  %2169 = vmatprep.subr.bf16.mxu0 %v2326_v1 }
 0x7c5   :  { %v1206_v13 = vpop.f32.mrb[32].mxu0 }
 0x7c6   :  { %v1213_v14 = vsel %vm43_vm4, %v1206_v13, -1e+30  ;;  %v2155_v16 = vpop.f32.mrb[33].mxu0 }
 0x7c7   :  { %v1209_v17 = vpop.f32.mrb[34].mxu0  ;;  %v1217_v19 = vsel %vm234_vm2, %v1213_v14, -inf }
 0x7c8   :  { %1218 = vmax.xlane.f32.xlu1 %v1217_v19  ;;  %v2156_v20 = vpop.f32.mrb[35].mxu0 }
 0x84c   :  { %v1216_v21 = vpop.xlane.xlu0 %1215 }
 0x84d   :  { %v1220_v24 = vsub.f32 %v1212_v7, %v1216_v21 }
 0x84f   :  { %v1222_v25 = vmul.f32 1.442695, %v1220_v24 }
 0x851   :  { %2286 = vpow2.f32 %v1222_v25 }
 0x855   :  { %v1219_v26 = vpop.xlane.xlu1 %1218 }
 0x856   :  { %v1221_v27 = vsub.f32 %v1213_v14, %v1219_v26 }
 0x858   :  { %v1224_v28 = vmul.f32 1.442695, %v1221_v27 }
 0x85a   :  { %2288 = vpow2.f32 %v1224_v28 }
 0x85b   :  { %v2287_v29 = vpop.eup %2286 }
 0x85c   :  { %v1226_v30 = vsel %vm234_vm2, %v2287_v29, 0.0 }
 0x85d   :  { %1227 = vadd.xlane.f32.xlu0 %v1226_v30 }
 0x864   :  { %v2289_v31 = vpop.eup %2288 }
 0x865   :  { %v1229_v32 = vsel %vm234_vm2, %v2289_v31, 0.0 }
 0x866   :  { %1230 = vadd.xlane.f32.xlu1 %v1229_v32 }
 0x8ea   :  { %v1228_v33 = vpop.xlane.xlu0 %1227 }
 0x8eb   :  { %2290 = vrcp.f32 %v1228_v33 }
 0x8f3   :  { %v1231_v34 = vpop.xlane.xlu1 %1230 }
 0x8f4   :  { %2292 = vrcp.f32 %v1231_v34 }
 0x8f5   :  { %v2291_v35 = vpop.eup %2290 }
 0x8f6   :  { %v1234_v36 = vmul.f32 %v2291_v35, %v2287_v29 }
 0x8f8   :  { %v1236_v38 = vpack.c.bf16 %v1234_v36, %v1234_v36 }
 0x8fa   :  { %2160 = vmatmul.mubr.msk.bf16.vlgmr.msra.gmra.mrb[44].mxu1 %vm234_vm2, %v1236_v38 }
 0x8fb   :  { %2176 = vmatpush3.bf16.msra.mxu1 %v2264_v37  ;;  %2179 = vmatprep.mubr.msk.bf16.mxu1 %vm2327_vm0, %v2326_v1 }
 0x8fc   :  { %2177 = vmatprep.subr.bf16.mxu1 %v2326_v1 }
 0x8fe   :  { %v2293_v42 = vpop.eup %2292 }
 0x8ff   :  { %v1235_v43 = vmul.f32 %v2293_v42, %v2289_v31  ;;  %2178 = vmatpush3.bf16.msra.mxu1 %v2265_v39 }
 0x900   :  { %2183 = vmatprep.subr.bf16.mxu1 %v2326_v1 }
 0x901   :  { %v1237_v45 = vpack.c.bf16 %v1235_v43, %v1235_v43 }
 0x902   :  { %2180 = vmatmul.mubr.msk.bf16.vlgmr.msra.gmra.mrb[48].mxu1 %vm69_vm1, %v2395_v5  ;;  %v1895_v5 = vld [vmem:[%s2730_s7 + $0x8] sm:$0xf] }
 0x903   :  { %2166 = vmatmul.mubr.msk.bf16.vlgmr.msra.gmra.mrb[36].mxu0 %vm234_vm2, %v1237_v45  ;;  %2184 = vmatpush3.bf16.msra.mxu1 %v2266_v44  ;;  %v1335_v47 = vsel %vm356_vm3, %v1895_v5, 0 }
 0x904   :  { %2185 = vmatprep.subr.bf16.mxu1 %v2326_v1  ;;  %2187 = vmatprep.mubr.msk.bf16.mxu1 %vm2327_vm0, %v2326_v1 }
 0x905   :  { %2171 = vmatprep.mubr.msk.bf16.mxu0 %vm2327_vm0, %v2326_v1  ;;  %2170 = vmatpush3.bf16.msra.mxu0 %v1335_v47 }
 0x906   :  { %2191 = vmatprep.subr.bf16.mxu0 %v2326_v1 }
 0x907   :  { %2186 = vmatpush3.bf16.msra.mxu1 %v2267_v46 }
 0x908   :  { %2199 = vmatprep.subr.bf16.mxu1 %v2326_v1 }
 0x90a   :  { %2188 = vmatmul.mubr.msk.bf16.vlgmr.msra.gmra.mrb[52].mxu1 %vm69_vm1, %v2415_v10  ;;  %v2268_v10 = vld [vmem:[%s2729_s6 + $0x30] sm:$0xff]  }
 0x90b   :  { %2201 = vmatprep.mubr.msk.bf16.mxu1 %vm2327_vm0, %v2326_v1 }
 0x9cd   :  { %v1278_v48 = vpop.f32.mrb[44].mxu1 }
 0x9ce   :  { %v2161_v49 = vpop.f32.mrb[45].mxu1 }
 0x9cf   :  { %v1281_v50 = vpop.f32.mrb[46].mxu1 }
 0x9d0   :  { %v2162_v51 = vpop.f32.mrb[47].mxu1  ;;  %v1922_v50 = vld [vmem:[%s2730_s7 + $0xc] sm:$0xf]  ;;  %s2302_s7 = scalar_lea.vmem %s1832_s21, 256 }
 0x9d1   :  { %v1779_v51 = vsel %vm356_vm3, %v1922_v50, 0  ;;  %p2303_p0 = scmp.ne.s32.totalorder %s1832_s21, %s2302_s7  ;;  %p2308_p2 = scmp.lt.s32.totalorder %s2302_s7, %s2302_s7 }
 0x9d3   :  { %p2309_p3 = por %p2308_p2, %p2307_p1 }
 0x9d5   :  { %v1443_v52 = vpop.f32.mrb[48].mxu1  ;;  %p2310_p4 = pnand %p2309_p3, %p2303_p0 }
 0x9d6   :  { %v1324_v53 = vpop.f32.mrb[36].mxu0  ;;  %v2181_v54 = vpop.f32.mrb[49].mxu1  ;;  %v1450_v2 = vmul.f32 0.35355338, %v1443_v52 }
 0x9d7   :  { %v1330_v55 = vpack.c.bf16 %v1324_v53, %v1278_v48  ;;  %v2167_v56 = vpop.f32.mrb[37].mxu0  ;;  %v1446_v18 = vpop.f32.mrb[50].mxu1 }
 0x9d8   :  { %v1327_v22 = vpop.f32.mrb[38].mxu0  ;;  %v2182_v23 = vpop.f32.mrb[51].mxu1  ;;  %v1558_v4 = vpack.c.bf16 %v1450_v2, %v1450_v2  ;;  %v1451_v7 = vmul.f32 0.35355338, %v1446_v18 }
 0x9d9   :  { %v2168_v57 = vpop.f32.mrb[39].mxu0  ;;  %2172 = vmatmul.mubr.msk.bf16.vlgmr.msra.gmra.mrb[24].mxu0 %vm234_vm2, %v1330_v55 }
 0x9da   :  { %2192 = vmatpush3.bf16.msra.mxu0 %v2268_v10  ;;  %2195 = vmatprep.mubr.msk.bf16.mxu0 %vm2327_vm0, %v2326_v1 }
 0x9db   :  { %2193 = vmatprep.subr.bf16.mxu0 %v2326_v1 }
 0x9dd   :  { %v1498_v59 = vpop.f32.mrb[52].mxu1 }
 0x9de   :  { %2194 = vmatpush3.bf16.msra.mxu0 %v2269_v58  ;;  %v1560_v60 = vpack.c.bf16 %v1498_v59, %v1498_v59  ;;  %v2189_v61 = vpop.f32.mrb[53].mxu1 }
 0x9df   :  { %v1501_v62 = vpop.f32.mrb[54].mxu1  ;;  %2205 = vmatprep.subr.bf16.mxu0 %v2326_v1 }
 0x9e0   :  { %v1568_v63 = vsel %vm234_vm2, %v1560_v60, 0  ;;  %v2190_v0 = vpop.f32.mrb[55].mxu1  ;;  %v1561_v3 = vpack.c.bf16 %v1501_v62, %v1501_v62 }
 0x9e1   :  { %2200 = vmatpush3.bf16.xpose.msra.mxu1 %v1568_v63  ;;  %2196 = vmatmul.mubr.msk.bf16.vlgmr.msra.gmra.mrb[40].mxu0 %vm69_vm1, %v2436_v15  ;;  %v1559_v15 = vpack.c.bf16 %v1451_v7, %v1451_v7 }
 0x9e2   :  { %2207 = vmatprep.mubr.msk.bf16.mxu0 %vm2327_vm0, %v2326_v1  ;;  %2211 = vmatprep.subr.bf16.mxu1 %v2326_v1  ;;  %v1614_v6 = vsel %vm234_vm2, %v1561_v3, 0 }
 0x9e7   :  { %2206 = vmatpush3.bf16.xpose.msra.mxu0 %v1614_v6 }
 0x9e8   :  { %2202 = vmatmul.mubr.msk.bf16.vlgmr.msra.gmra.mrb[56].mxu1 %vm234_vm2, %v1558_v4  ;;  %2217 = vmatprep.subr.bf16.mxu0 %v2326_v1 }
 0x9e9   :  { %2213 = vmatprep.mubr.msk.bf16.mxu1 %vm2327_vm0, %v2326_v1 }
 0x9ee   :  { %2208 = vmatmul.mubr.msk.bf16.vlgmr.msra.gmra.mrb[44].mxu0 %vm234_vm2, %v1559_v15 }
 0x9ef   :  { %2219 = vmatprep.mubr.msk.bf16.mxu0 %vm2327_vm0, %v2326_v1 }
 0xab4   :  { %v1551_v8 = vpop.f32.mrb[40].mxu0 }
 0xab5   :  { %v1562_v9 = vpack.c.bf16 %v1551_v8, %v1551_v8  ;;  %v2197_v11 = vpop.f32.mrb[41].mxu0 }
 0xab6   :  { %v1554_v12 = vpop.f32.mrb[42].mxu0 }
 0xab7   :  { %v1686_v13 = vsel %vm356_vm3, %v1562_v9, 0  ;;  %v1563_v14 = vpack.c.bf16 %v1554_v12, %v1554_v12  ;;  %v2198_v16 = vpop.f32.mrb[43].mxu0 }
 0xab8   :  { %2212 = vmatpush3.bf16.msra.mxu1 %v1686_v13 }
 0xab9   :  { %v1732_v17 = vsel %vm356_vm3, %v1563_v14, 0 }
 0xaba   :  { %2218 = vmatpush3.bf16.msra.mxu0 %v1732_v17 }
 0xabb   :  { %v1604_v19 = vpop.f32.mrb[56].mxu1  ;;  %2223 = vmatprep.subr.bf16.mxu0 %v2326_v1 }
 0xabc   :  { %v1656_v20 = vsel %vm42_vm5, %v1604_v19, -1e+30  ;;  %v2203_v21 = vpop.f32.mrb[57].mxu1 }
 0xabd   :  { %v1607_v24 = vpop.f32.mrb[58].mxu1  ;;  %v1658_v25 = vsel %vm234_vm2, %v1656_v20, -inf }
 0xabe   :  { %1659 = vmax.xlane.f32.xlu0 %v1658_v25  ;;  %v2204_v26 = vpop.f32.mrb[59].mxu1 }
 0xac1   :  { %v1650_v27 = vpop.f32.mrb[44].mxu0 }
 0xac2   :  { %v1657_v28 = vsel %vm43_vm4, %v1650_v27, -1e+30  ;;  %v2209_v29 = vpop.f32.mrb[45].mxu0 }
 0xac3   :  { %v1653_v30 = vpop.f32.mrb[46].mxu0  ;;  %v1661_v31 = vsel %vm234_vm2, %v1657_v28, -inf }
 0xac4   :  { %1662 = vmax.xlane.f32.xlu1 %v1661_v31  ;;  %v2210_v32 = vpop.f32.mrb[47].mxu0 }
 0xb4b   :  { %v1660_v33 = vpop.xlane.xlu0 %1659 }
 0xb4c   :  { %v1664_v34 = vsub.f32 %v1656_v20, %v1660_v33 }
 0xb4e   :  { %v1666_v41 = vmul.f32 1.442695, %v1664_v34 }
 0xb50   :  { %2294 = vpow2.f32 %v1666_v41 }
 0xb51   :  { %v1663_v35 = vpop.xlane.xlu1 %1662 }
 0xb52   :  { %v1665_v36 = vsub.f32 %v1657_v28, %v1663_v35 }
 0xb54   :  { %v1668_v37 = vmul.f32 1.442695, %v1665_v36 }
 0xb56   :  { %2296 = vpow2.f32 %v1668_v37 }
 0xb5a   :  { %v2295_v38 = vpop.eup %2294 }
 0xb5b   :  { %v1670_v39 = vsel %vm234_vm2, %v2295_v38, 0.0 }
 0xb5c   :  { %1671 = vadd.xlane.f32.xlu0 %v1670_v39 }
 0xb60   :  { %v2297_v40 = vpop.eup %2296 }
 0xb61   :  { %v1673_v42 = vsel %vm234_vm2, %v2297_v40, 0.0 }
 0xb62   :  { %1674 = vadd.xlane.f32.xlu1 %v1673_v42 }
 0xbe9   :  { %v1672_v43 = vpop.xlane.xlu0 %1671 }
 0xbea   :  { %2298 = vrcp.f32 %v1672_v43 }
 0xbef   :  { %v1675_v44 = vpop.xlane.xlu1 %1674 }
 0xbf0   :  { %2300 = vrcp.f32 %v1675_v44 }
 0xbf4   :  { %v2299_v45 = vpop.eup %2298 }
 0xbf5   :  { %v1678_v46 = vmul.f32 %v2299_v45, %v2295_v38 }
 0xbf7   :  { %v1680_v5 = vpack.c.bf16 %v1678_v46, %v1678_v46 }
 0xbf9   :  { %2214 = vmatmul.mubr.msk.bf16.vlgmr.msra.gmra.mrb[60].mxu1 %vm234_vm2, %v1680_v5 }
 0xbfa   :  { %v2301_v47 = vpop.eup %2300 }
 0xbfb   :  { %v1679_v48 = vmul.f32 %v2301_v47, %v2297_v40 }
 0xbfd   :  { %v1681_v49 = vpack.c.bf16 %v1679_v48, %v1679_v48 }
 0xbff   :  { %2220 = vmatmul.mubr.msk.bf16.vlgmr.msra.gmra.mrb[48].mxu0 %vm234_vm2, %v1681_v49 }
 0xc00   :  { %2225 = vmatprep.mubr.msk.bf16.mxu0 %vm2327_vm0, %v2326_v1  ;;  %2224 = vmatpush3.bf16.msra.mxu0 %v1779_v51 }
 0xccc   :  { %v1722_v52 = vpop.f32.mrb[60].mxu1 }
 0xccd   :  { %v2215_v53 = vpop.f32.mrb[61].mxu1 }
 0xcce   :  { %v1725_v54 = vpop.f32.mrb[62].mxu1 }
 0xccf   :  { %v2216_v10 = vpop.f32.mrb[63].mxu1 }
 0xcd2   :  { %v1768_v55 = vpop.f32.mrb[48].mxu0 }
 0xcd3   :  { %v1774_v56 = vpack.c.bf16 %v1768_v55, %v1722_v52  ;;  %v2221_v18 = vpop.f32.mrb[49].mxu0 }
 0xcd4   :  { %v1771_v22 = vpop.f32.mrb[50].mxu0 }
 0xcd5   :  { %v2222_v23 = vpop.f32.mrb[51].mxu0  ;;  %2226 = vmatmul.mubr.msk.bf16.vlgmr.msra.gmra.mrb[24].mxu0 %vm234_vm2, %v1774_v56 }
 0xda8   :  { %v1815_v1 = vpop.f32.mrb[24].mxu0 }
 0xda9   :  { %1824 = vst.msk [vmem:[#allocation2] sm:$0xff] %vm69_vm1, %v1815_v1  ;;  %v2227_v57 = vpop.f32.mrb[25].mxu0 }
 0xdaa   :  { %v1818_v58 = vpop.f32.mrb[26].mxu0 }
 0xdab   :  { %1825 = vst.msk [vmem:[#allocation2 + $0x8] sm:$0xff] %vm69_vm1, %v1818_v58  ;;  %v2228_v59 = vpop.f32.mrb[27].mxu0 }
 0xdac   :  { %2313 = shalt.err (!%p2310_p4)
}
 0xdad   :  { %s2314_s24 = scalar_lea.hbm %s2731_s8, 256 }
 0xdae   :  { %p2315_p5 = scmp.ne.s32.totalorder %s2731_s8, %s2314_s24  ;;  %p2318_p6 = scmp.lt.u32.totalorder %s2314_s24, %s2731_s8 }
 0xdb0   :  { %p2320_p7 = pnand %p2318_p6, %p2315_p5 }
 0xdb2   :  { %2323 = shalt.err (!%p2320_p7)
}
 0xdb3   :  { %s2329_s28 = smov 128   ;;  %s2330_s29 = smov 8  }
 0xdb4   :  { %1837 = dma.vmem_to_hbm [thread:$0]  %s1832_s21, 256, %s2731_s8, [#allocation3], %s2329_s28, %s2329_s28, %s2330_s29  }
 0xdb5   :  { %2324 = dma.done.wait [#allocation3], 256  }
 0xdb6   :  { %2325 = vsyncadd [#allocation3], 4294967040 }
 0xdb7   :  { %1841 = vsyncpa [#allocation3], 1 }

</bundles_post_ra>
